<compile_context>
chip_gen: v6e
topology: v6e:2x2x1
jax: 0.10.0
libtpu: 0.0.40
codegen_flags: <defaults>
</compile_context>

<pallas_src>
import functools

import jax
import jax.numpy as jnp
from jax.experimental import pallas as pl
from jax.experimental.pallas import tpu as pltpu


# ----------------------------------------------------------------------------
# Kernel helpers
# ----------------------------------------------------------------------------
def _head(x_ref, w1_ref, b1_ref, w2_ref, b2_ref, wd_ref, bd_ref):
    """One MLP head.  Returns p1 = softmax(logits)[:, 1:2] as (tb, 1) f32."""
    # Layer 1: bf16 x bf16 -> f32 accumulation on the MXU.
    h1 = jnp.maximum(
        jnp.dot(x_ref[...], w1_ref[...], preferred_element_type=jnp.float32)
        + b1_ref[...], 0.0)
    # Layer 2.
    h2 = jnp.maximum(
        jnp.dot(h1.astype(jnp.bfloat16), w2_ref[...],
                preferred_element_type=jnp.float32) + b2_ref[...], 0.0)
    # 2-class softmax == sigmoid of the logit difference.  The N=1 matmul is
    # replaced with an elementwise mul + lane reduction (VPU/XLU, MXU stays free).
    d = jnp.sum(h2 * wd_ref[...], axis=-1, keepdims=True) + bd_ref[...]
    d = jnp.clip(d, -60.0, 60.0)
    return pl.reciprocal(1.0 + jnp.exp(-d), approx=True)        # EUP


def _make_kernel(shared_x):
    n_x = 1 if shared_x else 2

    def kernel(*refs):
        x_sas_ref = refs[0]
        x_sa_ref = refs[0] if shared_x else refs[1]
        w = refs[n_x:n_x + 12]
        out_ref = refs[n_x + 12]

        p_sas = _head(x_sas_ref, *w[:6])   # (tb, 1)
        p_sa = _head(x_sa_ref, *w[6:])     # (tb, 1)

        # Pack both heads into one lane-dense (tb, 128) slab -> full-width vst.
        col = jax.lax.broadcasted_iota(jnp.int32, out_ref.shape, 1)
        out_ref[...] = jnp.where(
            col == 0, p_sas, jnp.where(col == 1, p_sa, 0.0)
        ).astype(out_ref.dtype)

    return kernel


# ----------------------------------------------------------------------------
# pallas_call wrapper
# ----------------------------------------------------------------------------
def _round_up(n, m):
    return (n + m - 1) // m * m


def _cdiv(a, b):
    return -(-a // b)


def _pack_head_params(p, w1_override=None):
    """nn.Linear params (stored as (in,out)/(1,out)) -> kernel operand list."""
    w1 = p["w1"] if w1_override is None else w1_override
    wd = (p["w3"][:, 1] - p["w3"][:, 0]).reshape(1, -1)   # (1, hidden)
    bd = (p["b3"][:, 1] - p["b3"][:, 0]).reshape(1, 1)    # (1, 1)
    return [
        w1.astype(jnp.bfloat16),
        p["b1"].astype(jnp.float32),
        p["w2"].astype(jnp.bfloat16),
        p["b2"].astype(jnp.float32),
        wd.astype(jnp.float32),
        bd.astype(jnp.float32),
    ]


def classifier_pallas(sas_x, sa_x, sas_p, sa_p, *, block_rows=1024):
    """sas_x: (B, 2S+A).  sa_x: (B, S+A) or None.
    sa_x=None means the sa head reads the first S+A columns of sas_x
    (no-noise path), implemented with a zero-row-padded sa W1."""
    batch = sas_x.shape[0]
    sas_in = sas_x.shape[1]
    shared = sa_x is None

    # --- batch tiling: multiple of 8 rows; >=2 grid steps when batch > 8 so
    # the "parallel" axis shards across both v7x TensorCores. ------------------
    rounded = _round_up(batch, 8)
    n_tiles = _cdiv(rounded, block_rows)
    if rounded > 8:
        n_tiles = max(n_tiles, 2)
    tb = _round_up(_cdiv(rounded, n_tiles), 8)
    padded = _round_up(batch, tb)
    grid = padded // tb

    def prep_x(x):
        if x.shape[0] != padded:
            x = jnp.pad(x, ((0, padded - x.shape[0]), (0, 0)))
        return x.astype(jnp.bfloat16)          # pre-cast: halves activation DMA

    x_arrays = [prep_x(sas_x)]
    x_specs = [pl.BlockSpec((tb, sas_in), lambda i: (i, 0))]
    if not shared:
        sa_in = sa_x.shape[1]
        x_arrays.append(prep_x(sa_x))
        x_specs.append(pl.BlockSpec((tb, sa_in), lambda i: (i, 0)))

    # --- weights (bf16 matmul operands, f32 biases / diff row) ---------------
    sas_params = _pack_head_params(sas_p)
    if shared:
        # Zero rows for the nextstate columns so x_sas @ W1_sa_padded == [s,a] @ W1_sa.
        sa_w1 = jnp.pad(sa_p["w1"],
                        ((0, sas_in - sa_p["w1"].shape[0]), (0, 0)))
        sa_params = _pack_head_params(sa_p, w1_override=sa_w1)
    else:
        sa_params = _pack_head_params(sa_p)
    weight_arrays = sas_params + sa_params
    # Constant index_map -> DMA'd once, VMEM-resident across grid steps.
    weight_specs = [pl.BlockSpec(a.shape, lambda i: (0, 0)) for a in weight_arrays]

    # --- lane-dense packed output slab ---------------------------------------
    out_shape = jax.ShapeDtypeStruct((padded, 128), jnp.float32)
    out_spec = pl.BlockSpec((tb, 128), lambda i: (i, 0))

    out = pl.pallas_call(
        _make_kernel(shared),
        out_shape=out_shape,
        grid_spec=pltpu.PrefetchScalarGridSpec(
            num_scalar_prefetch=0,
            grid=(grid,),
            in_specs=x_specs + weight_specs,
            out_specs=out_spec,
        ),
        compiler_params=pltpu.CompilerParams(
            dimension_semantics=("parallel",)),
    )(*(x_arrays + weight_arrays))

    p1_sas = out[:batch, 0:1]
    p1_sa = out[:batch, 1:2]
    sas_probs = jnp.concatenate([1.0 - p1_sas, p1_sas], axis=-1)
    sa_probs = jnp.concatenate([1.0 - p1_sa, p1_sa], axis=-1)
    return sas_probs, sa_probs


# ----------------------------------------------------------------------------
# Parameter init (mimics nn.Linear default init; weights stored as (in, out))
# ----------------------------------------------------------------------------
def init_mlp_params(key, input_dim, output_dim, hidden_size):
    ks = jax.random.split(key, 6)

    def lin(kw, kb, fan_in, fan_out):
        bound = 1.0 / jnp.sqrt(fan_in)
        w = jax.random.uniform(kw, (fan_in, fan_out), jnp.float32, -bound, bound)
        b = jax.random.uniform(kb, (1, fan_out), jnp.float32, -bound, bound)
        return w, b

    w1, b1 = lin(ks[0], ks[1], input_dim, hidden_size)
    w2, b2 = lin(ks[2], ks[3], hidden_size, hidden_size)
    w3, b3 = lin(ks[4], ks[5], hidden_size, output_dim)
    return dict(w1=w1, b1=b1, w2=w2, b2=b2, w3=w3, b3=b3)


def init_classifier_params(key, state_dim, action_dim, hidden_size=256):
    k_sa, k_sas = jax.random.split(key)
    return dict(
        sa=init_mlp_params(k_sa, state_dim + action_dim, 2, hidden_size),
        sas=init_mlp_params(k_sas, 2 * state_dim + action_dim, 2, hidden_size),
    )


# ----------------------------------------------------------------------------
# Forward pass (concat + noise in the wrapper, fused Pallas kernel)
# ----------------------------------------------------------------------------
def _build_inputs(state, action, nextstate, with_noise, key, std):
    """Concatenated head inputs; independent Gaussian noise per head, as in the
    reference module (torch.randn_like called once per concatenated tensor)."""
    sas = jnp.concatenate([state, action, nextstate], axis=-1)
    sa = jnp.concatenate([state, action], axis=-1)
    if with_noise:
        k1, k2 = jax.random.split(key)
        sas = sas + jax.random.normal(k1, sas.shape, sas.dtype) * std
        sa = sa + jax.random.normal(k2, sa.shape, sa.dtype) * std
    return sas, sa


@functools.partial(jax.jit, static_argnames=("with_noise",))
def classifier_forward(params, state_batch, action_batch, nextstate_batch,
                       with_noise, noise_key, gaussian_noise_std=1.0):
    sas, sa = _build_inputs(state_batch, action_batch, nextstate_batch,
                            with_noise, noise_key, gaussian_noise_std)
    if with_noise:
        return classifier_pallas(sas, sa, params["sas"], params["sa"])
    # No noise: sa input is exactly the first S+A columns of sas -> stream the
    # concat once and let the kernel reuse the tile for the sa head.
    return classifier_pallas(sas, None, params["sas"], params["sa"])


# ----------------------------------------------------------------------------
# Pure-JAX reference (full f32, exact softmax) for correctness checking
# ----------------------------------------------------------------------------
def _reference_forward(params, sas, sa):
    def mlp(p, x):
        h = jnp.maximum(x @ p["w1"] + p["b1"], 0.0)
        h = jnp.maximum(h @ p["w2"] + p["b2"], 0.0)
        return jax.nn.softmax(h @ p["w3"] + p["b3"], axis=-1)

    return mlp(params["sas"], sas), mlp(params["sa"], sa)


if __name__ == "__main__":
    key = jax.random.PRNGKey(0)
    k_param, k_state, k_action, k_next, k_noise = jax.random.split(key, 5)

    batch = 8
    state_dim = 16
    action_dim = 8
    hidden_size = 128

    params = init_classifier_params(k_param, state_dim, action_dim, hidden_size)

    state = jax.random.normal(k_state, (batch, state_dim), jnp.float32)
    action = jax.random.normal(k_action, (batch, action_dim), jnp.float32)
    nextstate = jax.random.normal(k_next, (batch, state_dim), jnp.float32)

    # --- with noise (separate-stream kernel variant) ---
    sas_probs, sa_probs = classifier_forward(
        params, state, action, nextstate, with_noise=True, noise_key=k_noise)
    jax.block_until_ready((sas_probs, sa_probs))

    sas_in, sa_in = _build_inputs(state, action, nextstate, True, k_noise, 1.0)
    ref_sas, ref_sa = _reference_forward(params, sas_in, sa_in)

    assert sas_probs.shape == (batch, 2) and sa_probs.shape == (batch, 2)
    # bf16 matmul operands + approx reciprocal -> relaxed (but tight) atol.
    assert jnp.allclose(sas_probs, ref_sas, atol=2e-2), "sas mismatch (noise)"
    assert jnp.allclose(sa_probs, ref_sa, atol=2e-2), "sa mismatch (noise)"
    assert jnp.allclose(jnp.sum(sas_probs, -1), 1.0, atol=1e-5)
    assert jnp.allclose(jnp.sum(sa_probs, -1), 1.0, atol=1e-5)

    # --- without noise (shared-stream kernel variant) ---
    sas_probs2, sa_probs2 = classifier_forward(
        params, state, action, nextstate, with_noise=False, noise_key=k_noise)
    jax.block_until_ready((sas_probs2, sa_probs2))

    sas_in2, sa_in2 = _build_inputs(state, action, nextstate, False, k_noise, 1.0)
    ref_sas2, ref_sa2 = _reference_forward(params, sas_in2, sa_in2)
    assert jnp.allclose(sas_probs2, ref_sas2, atol=2e-2), "sas mismatch"
    assert jnp.allclose(sa_probs2, ref_sa2, atol=2e-2), "sa mismatch"

    print("KERNEL_OK")
</pallas_src>

<mosaic_0001>
module attributes {stable_mosaic.version = 11 : i64} {
  func.func @kernel(%arg0: i32, %arg1: memref<8x40xbf16, #tpu.memory_space<vmem>>, %arg2: memref<8x24xbf16, #tpu.memory_space<vmem>>, %arg3: memref<40x128xbf16, #tpu.memory_space<vmem>>, %arg4: memref<1x128xf32, #tpu.memory_space<vmem>>, %arg5: memref<128x128xbf16, #tpu.memory_space<vmem>>, %arg6: memref<1x128xf32, #tpu.memory_space<vmem>>, %arg7: memref<1x128xf32, #tpu.memory_space<vmem>>, %arg8: memref<1x1xf32, #tpu.memory_space<vmem>>, %arg9: memref<24x128xbf16, #tpu.memory_space<vmem>>, %arg10: memref<1x128xf32, #tpu.memory_space<vmem>>, %arg11: memref<128x128xbf16, #tpu.memory_space<vmem>>, %arg12: memref<1x128xf32, #tpu.memory_space<vmem>>, %arg13: memref<1x128xf32, #tpu.memory_space<vmem>>, %arg14: memref<1x1xf32, #tpu.memory_space<vmem>>, %arg15: memref<8x128xf32, #tpu.memory_space<vmem>>) attributes {dimension_semantics = [#tpu.dimension_semantics<parallel>], iteration_bounds = array<i64: 1>, scalar_prefetch = 0 : i64, scratch_operands = 0 : i64, tpu.core_type = #tpu.core_type<tc>, window_params = [{transform_indices = @transform_0, window_bounds = array<i64: 8, 40>}, {transform_indices = @transform_1, window_bounds = array<i64: 8, 24>}, {pipeline_mode = #tpu.pipeline_mode<synchronous>, transform_indices = @transform_2, window_bounds = array<i64: 40, 128>}, {pipeline_mode = #tpu.pipeline_mode<synchronous>, transform_indices = @transform_3, window_bounds = array<i64: 1, 128>}, {pipeline_mode = #tpu.pipeline_mode<synchronous>, transform_indices = @transform_4, window_bounds = array<i64: 128, 128>}, {pipeline_mode = #tpu.pipeline_mode<synchronous>, transform_indices = @transform_5, window_bounds = array<i64: 1, 128>}, {pipeline_mode = #tpu.pipeline_mode<synchronous>, transform_indices = @transform_6, window_bounds = array<i64: 1, 128>}, {pipeline_mode = #tpu.pipeline_mode<synchronous>, transform_indices = @transform_7, window_bounds = array<i64: 1, 1>}, {pipeline_mode = #tpu.pipeline_mode<synchronous>, transform_indices = @transform_8, window_bounds = array<i64: 24, 128>}, {pipeline_mode = #tpu.pipeline_mode<synchronous>, transform_indices = @transform_9, window_bounds = array<i64: 1, 128>}, {pipeline_mode = #tpu.pipeline_mode<synchronous>, transform_indices = @transform_10, window_bounds = array<i64: 128, 128>}, {pipeline_mode = #tpu.pipeline_mode<synchronous>, transform_indices = @transform_11, window_bounds = array<i64: 1, 128>}, {pipeline_mode = #tpu.pipeline_mode<synchronous>, transform_indices = @transform_12, window_bounds = array<i64: 1, 128>}, {pipeline_mode = #tpu.pipeline_mode<synchronous>, transform_indices = @transform_13, window_bounds = array<i64: 1, 1>}, {transform_indices = @transform_14, window_bounds = array<i64: 8, 128>}]} {
    %c0 = arith.constant 0 : index
    %c0_0 = arith.constant 0 : index
    %0 = vector.load %arg1[%c0, %c0_0] : memref<8x40xbf16, #tpu.memory_space<vmem>>, vector<8x40xbf16>
    %c0_1 = arith.constant 0 : index
    %c0_2 = arith.constant 0 : index
    %1 = vector.load %arg3[%c0_1, %c0_2] : memref<40x128xbf16, #tpu.memory_space<vmem>>, vector<40x128xbf16>
    %cst = arith.constant dense<0.000000e+00> : vector<8x128xf32>
    %2 = tpu.matmul %0, %1, %cst {dimension_numbers = #tpu.dot_dimension_numbers<[1], [0], [0], [1], [0, 0, 1, 1], [], []>} : vector<8x40xbf16>, vector<40x128xbf16>, vector<8x128xf32> -> vector<8x128xf32>
    %c0_3 = arith.constant 0 : index
    %c0_4 = arith.constant 0 : index
    %3 = vector.load %arg4[%c0_3, %c0_4] : memref<1x128xf32, #tpu.memory_space<vmem>>, vector<1x128xf32>
    %4 = vector.broadcast %3 : vector<1x128xf32> to vector<8x128xf32>
    %5 = arith.addf %2, %4 : vector<8x128xf32>
    %cst_5 = arith.constant 0.000000e+00 : f32
    %6 = vector.broadcast %cst_5 : f32 to vector<8x128xf32>
    %7 = arith.maximumf %5, %6 : vector<8x128xf32>
    %8 = arith.truncf %7 : vector<8x128xf32> to vector<8x128xbf16>
    %c0_6 = arith.constant 0 : index
    %c0_7 = arith.constant 0 : index
    %9 = vector.load %arg5[%c0_6, %c0_7] : memref<128x128xbf16, #tpu.memory_space<vmem>>, vector<128x128xbf16>
    %cst_8 = arith.constant dense<0.000000e+00> : vector<8x128xf32>
    %10 = tpu.matmul %8, %9, %cst_8 {dimension_numbers = #tpu.dot_dimension_numbers<[1], [0], [0], [1], [0, 0, 1, 1], [], []>} : vector<8x128xbf16>, vector<128x128xbf16>, vector<8x128xf32> -> vector<8x128xf32>
    %c0_9 = arith.constant 0 : index
    %c0_10 = arith.constant 0 : index
    %11 = vector.load %arg6[%c0_9, %c0_10] : memref<1x128xf32, #tpu.memory_space<vmem>>, vector<1x128xf32>
    %12 = vector.broadcast %11 : vector<1x128xf32> to vector<8x128xf32>
    %13 = arith.addf %10, %12 : vector<8x128xf32>
    %cst_11 = arith.constant 0.000000e+00 : f32
    %14 = vector.broadcast %cst_11 : f32 to vector<8x128xf32>
    %15 = arith.maximumf %13, %14 : vector<8x128xf32>
    %c0_12 = arith.constant 0 : index
    %c0_13 = arith.constant 0 : index
    %16 = vector.load %arg7[%c0_12, %c0_13] : memref<1x128xf32, #tpu.memory_space<vmem>>, vector<1x128xf32>
    %17 = vector.broadcast %16 : vector<1x128xf32> to vector<8x128xf32>
    %18 = arith.mulf %15, %17 : vector<8x128xf32>
    %cst_14 = arith.constant dense<0.000000e+00> : vector<8xf32>
    %19 = vector.multi_reduction <add>, %18, %cst_14 [1] : vector<8x128xf32> to vector<8xf32>
    %20 = vector.shape_cast %19 : vector<8xf32> to vector<8x1xf32>
    %c0_15 = arith.constant 0 : index
    %c0_16 = arith.constant 0 : index
    %21 = vector.load %arg8[%c0_15, %c0_16] : memref<1x1xf32, #tpu.memory_space<vmem>>, vector<1x1xf32>
    %22 = vector.broadcast %21 : vector<1x1xf32> to vector<8x1xf32>
    %23 = arith.addf %20, %22 : vector<8x1xf32>
    %cst_17 = arith.constant -6.000000e+01 : f32
    %cst_18 = arith.constant 6.000000e+01 : f32
    %24 = vector.broadcast %cst_17 : f32 to vector<8x1xf32>
    %25 = arith.maximumf %24, %23 : vector<8x1xf32>
    %26 = vector.broadcast %cst_18 : f32 to vector<8x1xf32>
    %27 = arith.minimumf %26, %25 : vector<8x1xf32>
    %cst_19 = arith.constant 0.000000e+00 : f32
    %28 = vector.broadcast %cst_19 : f32 to vector<8x1xf32>
    %29 = arith.subf %28, %27 : vector<8x1xf32>
    %30 = math.exp %29 : vector<8x1xf32>
    %cst_20 = arith.constant 1.000000e+00 : f32
    %31 = vector.broadcast %cst_20 : f32 to vector<8x1xf32>
    %32 = arith.addf %31, %30 : vector<8x1xf32>
    %33 = tpu.reciprocal %32 {approx = true} : vector<8x1xf32> -> vector<8x1xf32>
    %c0_21 = arith.constant 0 : index
    %c0_22 = arith.constant 0 : index
    %34 = vector.load %arg2[%c0_21, %c0_22] : memref<8x24xbf16, #tpu.memory_space<vmem>>, vector<8x24xbf16>
    %c0_23 = arith.constant 0 : index
    %c0_24 = arith.constant 0 : index
    %35 = vector.load %arg9[%c0_23, %c0_24] : memref<24x128xbf16, #tpu.memory_space<vmem>>, vector<24x128xbf16>
    %cst_25 = arith.constant dense<0.000000e+00> : vector<8x128xf32>
    %36 = tpu.matmul %34, %35, %cst_25 {dimension_numbers = #tpu.dot_dimension_numbers<[1], [0], [0], [1], [0, 0, 1, 1], [], []>} : vector<8x24xbf16>, vector<24x128xbf16>, vector<8x128xf32> -> vector<8x128xf32>
    %c0_26 = arith.constant 0 : index
    %c0_27 = arith.constant 0 : index
    %37 = vector.load %arg10[%c0_26, %c0_27] : memref<1x128xf32, #tpu.memory_space<vmem>>, vector<1x128xf32>
    %38 = vector.broadcast %37 : vector<1x128xf32> to vector<8x128xf32>
    %39 = arith.addf %36, %38 : vector<8x128xf32>
    %cst_28 = arith.constant 0.000000e+00 : f32
    %40 = vector.broadcast %cst_28 : f32 to vector<8x128xf32>
    %41 = arith.maximumf %39, %40 : vector<8x128xf32>
    %42 = arith.truncf %41 : vector<8x128xf32> to vector<8x128xbf16>
    %c0_29 = arith.constant 0 : index
    %c0_30 = arith.constant 0 : index
    %43 = vector.load %arg11[%c0_29, %c0_30] : memref<128x128xbf16, #tpu.memory_space<vmem>>, vector<128x128xbf16>
    %cst_31 = arith.constant dense<0.000000e+00> : vector<8x128xf32>
    %44 = tpu.matmul %42, %43, %cst_31 {dimension_numbers = #tpu.dot_dimension_numbers<[1], [0], [0], [1], [0, 0, 1, 1], [], []>} : vector<8x128xbf16>, vector<128x128xbf16>, vector<8x128xf32> -> vector<8x128xf32>
    %c0_32 = arith.constant 0 : index
    %c0_33 = arith.constant 0 : index
    %45 = vector.load %arg12[%c0_32, %c0_33] : memref<1x128xf32, #tpu.memory_space<vmem>>, vector<1x128xf32>
    %46 = vector.broadcast %45 : vector<1x128xf32> to vector<8x128xf32>
    %47 = arith.addf %44, %46 : vector<8x128xf32>
    %cst_34 = arith.constant 0.000000e+00 : f32
    %48 = vector.broadcast %cst_34 : f32 to vector<8x128xf32>
    %49 = arith.maximumf %47, %48 : vector<8x128xf32>
    %c0_35 = arith.constant 0 : index
    %c0_36 = arith.constant 0 : index
    %50 = vector.load %arg13[%c0_35, %c0_36] : memref<1x128xf32, #tpu.memory_space<vmem>>, vector<1x128xf32>
    %51 = vector.broadcast %50 : vector<1x128xf32> to vector<8x128xf32>
    %52 = arith.mulf %49, %51 : vector<8x128xf32>
    %cst_37 = arith.constant dense<0.000000e+00> : vector<8xf32>
    %53 = vector.multi_reduction <add>, %52, %cst_37 [1] : vector<8x128xf32> to vector<8xf32>
    %54 = vector.shape_cast %53 : vector<8xf32> to vector<8x1xf32>
    %c0_38 = arith.constant 0 : index
    %c0_39 = arith.constant 0 : index
    %55 = vector.load %arg14[%c0_38, %c0_39] : memref<1x1xf32, #tpu.memory_space<vmem>>, vector<1x1xf32>
    %56 = vector.broadcast %55 : vector<1x1xf32> to vector<8x1xf32>
    %57 = arith.addf %54, %56 : vector<8x1xf32>
    %cst_40 = arith.constant -6.000000e+01 : f32
    %cst_41 = arith.constant 6.000000e+01 : f32
    %58 = vector.broadcast %cst_40 : f32 to vector<8x1xf32>
    %59 = arith.maximumf %58, %57 : vector<8x1xf32>
    %60 = vector.broadcast %cst_41 : f32 to vector<8x1xf32>
    %61 = arith.minimumf %60, %59 : vector<8x1xf32>
    %cst_42 = arith.constant 0.000000e+00 : f32
    %62 = vector.broadcast %cst_42 : f32 to vector<8x1xf32>
    %63 = arith.subf %62, %61 : vector<8x1xf32>
    %64 = math.exp %63 : vector<8x1xf32>
    %cst_43 = arith.constant 1.000000e+00 : f32
    %65 = vector.broadcast %cst_43 : f32 to vector<8x1xf32>
    %66 = arith.addf %65, %64 : vector<8x1xf32>
    %67 = tpu.reciprocal %66 {approx = true} : vector<8x1xf32> -> vector<8x1xf32>
    %68 = tpu.iota {dimensions = array<i32: 1>} : vector<8x128xi32>
    %c0_i32 = arith.constant 0 : i32
    %69 = vector.broadcast %c0_i32 : i32 to vector<8x128xi32>
    %70 = arith.cmpi eq, %68, %69 : vector<8x128xi32>
    %c1_i32 = arith.constant 1 : i32
    %71 = vector.broadcast %c1_i32 : i32 to vector<8x128xi32>
    %72 = arith.cmpi eq, %68, %71 : vector<8x128xi32>
    %cst_44 = arith.constant 0.000000e+00 : f32
    %73 = vector.shape_cast %67 : vector<8x1xf32> to vector<8x1xf32>
    %74 = vector.broadcast %73 : vector<8x1xf32> to vector<8x128xf32>
    %75 = vector.broadcast %cst_44 : f32 to vector<8x128xf32>
    %76 = arith.select %72, %74, %75 : vector<8x128xi1>, vector<8x128xf32>
    %77 = vector.shape_cast %33 : vector<8x1xf32> to vector<8x1xf32>
    %78 = vector.broadcast %77 : vector<8x1xf32> to vector<8x128xf32>
    %79 = arith.select %70, %78, %76 : vector<8x128xi1>, vector<8x128xf32>
    %c0_45 = arith.constant 0 : index
    %c0_46 = arith.constant 0 : index
    %80 = vector.load %arg15[%c0_45, %c0_46] : memref<8x128xf32, #tpu.memory_space<vmem>>, vector<8x128xf32>
    tpu.vector_store %arg15[%c0_45, %c0_46], %79 {strides = array<i32>} : memref<8x128xf32, #tpu.memory_space<vmem>>, vector<8x128xf32>,
    return
  }
  func.func @transform_0(%arg0: i32) -> (i32, i32) {
    %c0_i32 = arith.constant 0 : i32
    %c0_i32_0 = arith.constant 0 : i32
    return %arg0, %c0_i32 : i32, i32
  }
  func.func @transform_1(%arg0: i32) -> (i32, i32) {
    %c0_i32 = arith.constant 0 : i32
    %c0_i32_0 = arith.constant 0 : i32
    return %arg0, %c0_i32 : i32, i32
  }
  func.func @transform_2(%arg0: i32) -> (i32, i32) {
    %c0_i32 = arith.constant 0 : i32
    %c0_i32_0 = arith.constant 0 : i32
    %c0_i32_1 = arith.constant 0 : i32
    return %c0_i32, %c0_i32_0 : i32, i32
  }
  func.func @transform_3(%arg0: i32) -> (i32, i32) {
    %c0_i32 = arith.constant 0 : i32
    %c0_i32_0 = arith.constant 0 : i32
    %c0_i32_1 = arith.constant 0 : i32
    return %c0_i32, %c0_i32_0 : i32, i32
  }
  func.func @transform_4(%arg0: i32) -> (i32, i32) {
    %c0_i32 = arith.constant 0 : i32
    %c0_i32_0 = arith.constant 0 : i32
    %c0_i32_1 = arith.constant 0 : i32
    return %c0_i32, %c0_i32_0 : i32, i32
  }
  func.func @transform_5(%arg0: i32) -> (i32, i32) {
    %c0_i32 = arith.constant 0 : i32
    %c0_i32_0 = arith.constant 0 : i32
    %c0_i32_1 = arith.constant 0 : i32
    return %c0_i32, %c0_i32_0 : i32, i32
  }
  func.func @transform_6(%arg0: i32) -> (i32, i32) {
    %c0_i32 = arith.constant 0 : i32
    %c0_i32_0 = arith.constant 0 : i32
    %c0_i32_1 = arith.constant 0 : i32
    return %c0_i32, %c0_i32_0 : i32, i32
  }
  func.func @transform_7(%arg0: i32) -> (i32, i32) {
    %c0_i32 = arith.constant 0 : i32
    %c0_i32_0 = arith.constant 0 : i32
    %c0_i32_1 = arith.constant 0 : i32
    return %c0_i32, %c0_i32_0 : i32, i32
  }
  func.func @transform_8(%arg0: i32) -> (i32, i32) {
    %c0_i32 = arith.constant 0 : i32
    %c0_i32_0 = arith.constant 0 : i32
    %c0_i32_1 = arith.constant 0 : i32
    return %c0_i32, %c0_i32_0 : i32, i32
  }
  func.func @transform_9(%arg0: i32) -> (i32, i32) {
    %c0_i32 = arith.constant 0 : i32
    %c0_i32_0 = arith.constant 0 : i32
    %c0_i32_1 = arith.constant 0 : i32
    return %c0_i32, %c0_i32_0 : i32, i32
  }
  func.func @transform_10(%arg0: i32) -> (i32, i32) {
    %c0_i32 = arith.constant 0 : i32
    %c0_i32_0 = arith.constant 0 : i32
    %c0_i32_1 = arith.constant 0 : i32
    return %c0_i32, %c0_i32_0 : i32, i32
  }
  func.func @transform_11(%arg0: i32) -> (i32, i32) {
    %c0_i32 = arith.constant 0 : i32
    %c0_i32_0 = arith.constant 0 : i32
    %c0_i32_1 = arith.constant 0 : i32
    return %c0_i32, %c0_i32_0 : i32, i32
  }
  func.func @transform_12(%arg0: i32) -> (i32, i32) {
    %c0_i32 = arith.constant 0 : i32
    %c0_i32_0 = arith.constant 0 : i32
    %c0_i32_1 = arith.constant 0 : i32
    return %c0_i32, %c0_i32_0 : i32, i32
  }
  func.func @transform_13(%arg0: i32) -> (i32, i32) {
    %c0_i32 = arith.constant 0 : i32
    %c0_i32_0 = arith.constant 0 : i32
    %c0_i32_1 = arith.constant 0 : i32
    return %c0_i32, %c0_i32_0 : i32, i32
  }
  func.func @transform_14(%arg0: i32) -> (i32, i32) {
    %c0_i32 = arith.constant 0 : i32
    %c0_i32_0 = arith.constant 0 : i32
    return %arg0, %c0_i32 : i32, i32
  }
}

</mosaic_0001>

<bundles_post_ra>
// kernel: classifier_forward.1
= control target key start
LH: loop header
LB: loop body
LE: loop exit
PB: predicated region body
PF: predicated region fallthrough
CT: control target
= control target key end

     0   :  { %vm84_vm0 = vcmask 1043456   ;;  %v644_v0 = vmov 0.0   ;;  %vm645_vm1 = vmmov 0   ;;  %vm287_vm2 = vcmask 195584   ;;  %s847_s2 = inlined_call_operand.vmem [shape: bf16[40,128], index: 2, kind: input, shape index: {}]   ;;  %s848_s8 = inlined_call_operand.vmem [shape: bf16[24,128], index: 8, kind: input, shape index: {}]   ;;  %s849_s1 = inlined_call_operand.vmem [shape: bf16[8,24], index: 1, kind: input, shape index: {}]   ;;  %s850_s10 = inlined_call_operand.vmem [shape: bf16[128,128], index: 10, kind: input, shape index: {}]   ;;  %s851_s4 = inlined_call_operand.vmem [shape: bf16[128,128], index: 4, kind: input, shape index: {}]   ;;  %s852_s0 = inlined_call_operand.vmem [shape: bf16[8,40], index: 0, kind: input, shape index: {}]   ;;  %s853_s9 = inlined_call_operand.vmem [shape: f32[1,128], index: 9, kind: input, shape index: {}]   ;;  %s854_s3 = inlined_call_operand.vmem [shape: f32[1,128], index: 3, kind: input, shape index: {}]   ;;  %s855_s13 = inlined_call_operand.<no memory space> [shape: f32[1,1], index: 13, kind: input, shape index: {}]   ;;  %s856_s11 = inlined_call_operand.vmem [shape: f32[1,128], index: 11, kind: input, shape index: {}]   ;;  %s857_s5 = inlined_call_operand.vmem [shape: f32[1,128], index: 5, kind: input, shape index: {}]   ;;  %s858_s12 = inlined_call_operand.vmem [shape: f32[1,128], index: 12, kind: input, shape index: {}]   ;;  %s859_s6 = inlined_call_operand.vmem [shape: f32[1,128], index: 6, kind: input, shape index: {}]   ;;  %s860_s7 = inlined_call_operand.<no memory space> [shape: f32[1,1], index: 7, kind: input, shape index: {}]   ;;  %s861_s14 = inlined_call_operand.vmem [shape: f32[8,128], index: 14, kind: output, shape index: {}]  }
   0x1   :  { %552 = vmatprep.subr.bf16.mxu1 %v644_v0  ;;  %582 = vmatprep.subr.bf16.mxu0 %v644_v0  ;;  %v615_v1 = vld [vmem:[%s847_s2 + $0x10] ss:$0 sps:$4 sm:$0xff]   ;;  %v616_v2 = vld [vmem:[%s848_s8 + $0x8] ss:$0 sps:$4 sm:$0xff]   ;;  %v618_v6 = vld [vmem:[%s848_s8] sm:$0xff]   ;;  %vm80_vm3 = vcmask 326656   ;;  %v21_v42 = vstv %s855_s13 }
   0x2   :  { %586 = vmatprep.mubr.msk.bf16.mxu0 %vm645_vm1, %v644_v0  ;;  %558 = vmatprep.mubr.msk.bf16.mxu1 %vm645_vm1, %v644_v0  ;;  %v86_v3 = vsel %vm84_vm0, %v615_v1, 0  ;;  %v292_v4 = vsel %vm84_vm0, %v616_v2, 0  ;;  %v617_v5 = vld [vmem:[%s847_s2 + $0x8] sm:$0xff]   ;;  %v267_v7 = vld [vmem:[%s849_s1] sm:$0xf]  ;;  %v620_v9 = vld [vmem:[%s850_s10 + $0x38] sm:$0xff]   ;;  %v19_v61 = vstv %s860_s7 }
   0x3   :  { %553 = vmatpush3.bf16.msra.mxu1 %v86_v3  ;;  %583 = vmatpush3.bf16.msra.mxu0 %v292_v4  ;;  %v619_v8 = vld [vmem:[%s847_s2] sm:$0xff]   ;;  %v621_v11 = vld [vmem:[%s851_s4 + $0x38] sm:$0xff]   ;;  %v622_v12 = vld [vmem:[%s850_s10 + $0x30] sm:$0xff]   ;;  %22 = vst [vmem:[#allocation3] sm:$0x1] %v21_v42  ;;  %v646_v62 = vmov 0  }
   0x4   :  { %554 = vmatprep.subr.bf16.mxu1 %v644_v0  ;;  %584 = vmatprep.subr.bf16.mxu0 %v644_v0  ;;  %v52_v10 = vld [vmem:[%s852_s0] sm:$0xf]  ;;  %v623_v13 = vld [vmem:[%s851_s4 + $0x30] sm:$0xff]   ;;  %v624_v14 = vld [vmem:[%s850_s10 + $0x28] sm:$0xff]   ;;  %20 = vst [vmem:[#allocation2] sm:$0x1] %v19_v61 }
   0x5   :  { %v625_v15 = vld [vmem:[%s851_s4 + $0x28] sm:$0xff]   ;;  %v626_v16 = vld [vmem:[%s850_s10 + $0x20] sm:$0xff]   ;;  %v628_v18 = vld [vmem:[%s850_s10 + $0x18] sm:$0xff]   ;;  %613 = vset.pattern.permute.xlu1 %v646_v62  ;;  %614 = vset.pattern.permute.xlu0 %v646_v62 }
   0x6   :  { %v627_v17 = vld [vmem:[%s851_s4 + $0x20] sm:$0xff]   ;;  %v629_v19 = vld [vmem:[%s851_s4 + $0x18] sm:$0xff]   ;;  %v630_v20 = vld [vmem:[%s850_s10 + $0x10] sm:$0xff]  }
   0x7   :  { %555 = vmatpush3.bf16.msra.mxu1 %v617_v5  ;;  %585 = vmatpush3.bf16.msra.mxu0 %v618_v6  ;;  %v631_v21 = vld [vmem:[%s851_s4 + $0x10] sm:$0xff]   ;;  %v632_v22 = vld [vmem:[%s850_s10 + $0x8] sm:$0xff]   ;;  %v634_v24 = vld [vmem:[%s850_s10] sm:$0xff]  }
   0x8   :  { %556 = vmatprep.subr.bf16.mxu1 %v644_v0  ;;  %590 = vmatprep.subr.bf16.mxu0 %v644_v0  ;;  %v633_v23 = vld [vmem:[%s851_s4 + $0x8] sm:$0xff]   ;;  %v635_v25 = vld [vmem:[%s851_s4] sm:$0xff]  }
   0x9   :  { %v511_v26 = vld [vmem:[%s853_s9] ss:$0 sm:$0xff] }
   0xa   :  { %587 = vmatmul.mubr.msk.bf16.vlgmr.msra.gmra.mxu0 %vm287_vm2, %v267_v7  ;;  %v494_v29 = vld [vmem:[%s854_s3] ss:$0 sm:$0xff]  ;;  %v525_v63 = vld [vmem:[#allocation3] ss:$0 sm:$0xff] }
   0xb   :  { %557 = vmatpush3.bf16.msra.mxu1 %v619_v8  ;;  %591 = vmatpush3.bf16.msra.mxu0 %v620_v9  ;;  %v515_v43 = vld [vmem:[%s856_s11] ss:$0 sm:$0xff] }
   0xc   :  { %562 = vmatprep.subr.bf16.mxu1 %v644_v0  ;;  %592 = vmatprep.subr.bf16.mxu0 %v644_v0  ;;  %v499_v46 = vld [vmem:[%s857_s5] ss:$0 sm:$0xff] }
   0xd   :  { %606 = vmatprep.mubr.msk.bf16.mxu0 %vm645_vm1, %v644_v0  ;;  %v524_v48 = vld [vmem:[%s858_s12] ss:$0 sm:$0xff] }
   0xe   :  { %559 = vmatmul.mubr.msk.bf16.vlgmr.msra.gmra.mxu1 %vm80_vm3, %v52_v10  ;;  %v508_v55 = vld [vmem:[%s859_s6] ss:$0 sm:$0xff] }
   0xf   :  { %563 = vmatpush3.bf16.msra.mxu1 %v621_v11  ;;  %578 = vmatprep.mubr.msk.bf16.mxu1 %vm645_vm1, %v644_v0  ;;  %v509_v2 = vld [vmem:[#allocation2] ss:$0 sm:$0xff] }
  0x10   :  { %593 = vmatpush3.bf16.msra.mxu0 %v622_v12  ;;  %564 = vmatprep.subr.bf16.mxu1 %v644_v0 }
  0x11   :  { %594 = vmatprep.subr.bf16.mxu0 %v644_v0 }
  0x13   :  { %565 = vmatpush3.bf16.msra.mxu1 %v623_v13 }
  0x14   :  { %595 = vmatpush3.bf16.msra.mxu0 %v624_v14  ;;  %566 = vmatprep.subr.bf16.mxu1 %v644_v0 }
  0x15   :  { %596 = vmatprep.subr.bf16.mxu0 %v644_v0 }
  0x17   :  { %567 = vmatpush3.bf16.msra.mxu1 %v625_v15 }
  0x18   :  { %597 = vmatpush3.bf16.msra.mxu0 %v626_v16  ;;  %568 = vmatprep.subr.bf16.mxu1 %v644_v0 }
  0x19   :  { %598 = vmatprep.subr.bf16.mxu0 %v644_v0 }
  0x1b   :  { %569 = vmatpush3.bf16.msra.mxu1 %v627_v17  ;;  %v473_v17 = vlaneseq }
  0x1c   :  { %599 = vmatpush3.bf16.msra.mxu0 %v628_v18  ;;  %570 = vmatprep.subr.bf16.mxu1 %v644_v0 }
  0x1d   :  { %600 = vmatprep.subr.bf16.mxu0 %v644_v0  ;;  %v474_v18 = vand.u32 127, %v473_v17 }
  0x1f   :  { %571 = vmatpush3.bf16.msra.mxu1 %v629_v19  ;;  %vm476_vm4 = vcmp.eq.s32.totalorder %v474_v18, 1  ;;  %vm475_vm5 = vcmp.eq.s32.totalorder %v474_v18, 0 }
  0x20   :  { %601 = vmatpush3.bf16.msra.mxu0 %v630_v20  ;;  %572 = vmatprep.subr.bf16.mxu1 %v644_v0 }
  0x21   :  { %602 = vmatprep.subr.bf16.mxu0 %v644_v0 }
  0x23   :  { %573 = vmatpush3.bf16.msra.mxu1 %v631_v21 }
  0x24   :  { %574 = vmatprep.subr.bf16.mxu1 %v644_v0  ;;  %603 = vmatpush3.bf16.msra.mxu0 %v632_v22 }
  0x25   :  { %604 = vmatprep.subr.bf16.mxu0 %v644_v0 }
  0x27   :  { %575 = vmatpush3.bf16.msra.mxu1 %v633_v23 }
  0x28   :  { %605 = vmatpush3.bf16.msra.mxu0 %v634_v24  ;;  %576 = vmatprep.subr.bf16.mxu1 %v644_v0 }
  0x2b   :  { %577 = vmatpush3.bf16.msra.mxu1 %v635_v25 }
  0xca   :  { %v328_v27 = vpop.f32.mrf.mxu0 }
  0xcb   :  { %v329_v28 = vadd.f32 %v511_v26, %v328_v27 }
  0xcc   :  { %v588_v30 = vpop.f32.mrf.mxu0 }
  0xcd   :  { %v334_v31 = vmax.f32 %v329_v28, 0.0 }
  0xce   :  { %v122_v32 = vpop.f32.mrf.mxu1  ;;  %v331_v34 = vpop.f32.mrf.mxu0 }
  0xcf   :  { %v123_v33 = vadd.f32 %v494_v29, %v122_v32  ;;  %v335_v35 = vpack.c.bf16 %v334_v31, %v334_v31 }
  0xd0   :  { %v560_v36 = vpop.f32.mrf.mxu1  ;;  %v589_v38 = vpop.f32.mrf.mxu0 }
  0xd1   :  { %v128_v37 = vmax.f32 %v123_v33, 0.0  ;;  %607 = vmatmul.mubr.bf16.vlgmr.msra.gmra.mxu0 %v335_v35 }
  0xd2   :  { %v125_v39 = vpop.f32.mrf.mxu1 }
  0xd3   :  { %v129_v40 = vpack.c.bf16 %v128_v37, %v128_v37 }
  0xd4   :  { %v561_v41 = vpop.f32.mrf.mxu1 }
  0xd5   :  { %579 = vmatmul.mubr.bf16.vlgmr.msra.gmra.mxu1 %v129_v40 }
 0x191   :  { %v441_v44 = vpop.f32.mrf.mxu0 }
 0x192   :  { %v442_v45 = vadd.f32 %v515_v43, %v441_v44 }
 0x193   :  { %v608_v47 = vpop.f32.mrf.mxu0 }
 0x194   :  { %v447_v49 = vmax.f32 %v442_v45, 0.0 }
 0x195   :  { %v235_v50 = vpop.f32.mrf.mxu1  ;;  %v444_v52 = vpop.f32.mrf.mxu0 }
 0x196   :  { %v236_v51 = vadd.f32 %v499_v46, %v235_v50  ;;  %v455_v54 = vmul.f32 %v524_v48, %v447_v49 }
 0x197   :  { %v580_v53 = vpop.f32.mrf.mxu1  ;;  %v609_v57 = vpop.f32.mrf.mxu0 }
 0x198   :  { %v241_v56 = vmax.f32 %v236_v51, 0.0  ;;  %456 = vadd.xlane.f32.xlu0 %v455_v54 }
 0x199   :  { %v238_v58 = vpop.f32.mrf.mxu1 }
 0x19a   :  { %v249_v59 = vmul.f32 %v508_v55, %v241_v56 }
 0x19b   :  { %v581_v60 = vpop.f32.mrf.mxu1 }
 0x19c   :  { %250 = vadd.xlane.f32.xlu0 %v249_v59 }
 0x221   :  { %v457_v0 = vpop.xlane.xlu0 %456 }
 0x222   :  { %v465_v1 = vadd.f32 %v525_v63, %v457_v0 }
 0x224   :  { %v526_v3 = vclamps-f32 %v465_v1, 60.0 }
 0x225   :  { %v251_v4 = vpop.xlane.xlu0 %250 }
 0x226   :  { %v468_v5 = vsub.f32 0.0, %v526_v3  ;;  %v259_v6 = vadd.f32 %v509_v2, %v251_v4 }
 0x228   :  { %v469_v7 = vmul.f32 1.442695, %v468_v5  ;;  %v510_v8 = vclamps-f32 %v259_v6, 60.0 }
 0x22a   :  { %636 = vpow2.f32 %v469_v7  ;;  %v262_v9 = vsub.f32 0.0, %v510_v8 }
 0x22c   :  { %v263_v10 = vmul.f32 1.442695, %v262_v9 }
 0x22e   :  { %638 = vpow2.f32 %v263_v10 }
 0x237   :  { %v637_v11 = vpop.eup %636 }
 0x238   :  { %v471_v12 = vadd.f32 1.0, %v637_v11 }
 0x23a   :  { %640 = vrcp.f32 %v471_v12 }
 0x23b   :  { %v639_v13 = vpop.eup %638 }
 0x23c   :  { %v265_v14 = vadd.f32 1.0, %v639_v13 }
 0x23e   :  { %642 = vrcp.f32 %v265_v14 }
 0x247   :  { %v641_v15 = vpop.eup %640 }
 0x248   :  { %479 = vperm.xlu1 %613, %v641_v15  }
 0x24b   :  { %v643_v16 = vpop.eup %642 }
 0x24c   :  { %485 = vperm.xlu1 %613, %v643_v16  }
 0x2c3   :  { %v480_v19 = vpop.permute.xlu1 %479 }
 0x2c4   :  { %v482_v20 = vsel %vm476_vm4, %v480_v19, 0.0 }
 0x2c7   :  { %v486_v21 = vpop.permute.xlu1 %485 }
 0x2c8   :  { %v488_v22 = vsel %vm475_vm5, %v486_v21, %v482_v20 }
 0x2c9   :  { %489 = vst [vmem:[%s861_s14] sm:$0xff] %v488_v22 }

</bundles_post_ra>
